<compile_context>
chip_gen: v6e
topology: v6e:2x2x1
jax: 0.10.0
libtpu: 0.0.40
codegen_flags: <defaults>
</compile_context>

<pallas_src>
import functools

import jax
import jax.numpy as jnp
from jax import lax
from jax.experimental import pallas as pl
from jax.experimental.pallas import tpu as pltpu


def _round_up(x, m):
    return ((x + m - 1) // m) * m


def _fgxcorr_kernel(t_ref, s_ref, o_ref, *, norm, imgs_per_step, num_images,
                    chunks, guard_tail):
    """One grid step: one template j x `imgs_per_step` search images.

    t_ref: (1, HWt, C)        -- template j (constant along the inner grid axis)
    s_ref: (bi, 1, C, HWs)    -- bi search images that share template j
    o_ref: (bi, 1, HWt, HWs)
    """
    t = t_ref[0]                                            # (HWt, C), native dtype (MXU operand)

    if norm:
        tf = t.astype(jnp.float32)
        mag_t = jnp.sqrt(jnp.sum(tf * tf, axis=1, keepdims=True))   # (HWt, 1)

    def compute_one(i):
        # Chunk along the lane (HWs) dim so the f32 accumulator stays <= ~32 vregs.
        for c0, cn in chunks:                               # static python chunk list
            s = s_ref[i, 0, :, c0:c0 + cn]                  # (C, cn), native dtype
            x = jnp.dot(t, s, preferred_element_type=jnp.float32)   # (HWt, cn) f32 acc
            if norm:
                # f32 upcast kept (per chunk, so footprint is bounded) for parity
                # with the f32 torch reference; for bf16 inputs one could square
                # in bf16 on v6e/v7x at a small precision cost.
                sf = s.astype(jnp.float32)
                mag_s = jnp.sqrt(jnp.sum(sf * sf, axis=0, keepdims=True))  # (1, cn)
                nrm = mag_t * mag_s + 1e-8
                r = pl.reciprocal(nrm, approx=True)         # EUP (free VLIW slot)
                r = r * (2.0 - nrm * r)                     # one Newton step -> ~2^-24 rel err
                x = x * r
            o_ref[i, 0, :, c0:c0 + cn] = x.astype(o_ref.dtype)

    if imgs_per_step == 1 and not guard_tail:
        compute_one(0)                                      # fully static fast path
    else:
        base = pl.program_id(1) * imgs_per_step

        def body(i, carry):
            if guard_tail:
                pl.when(base + i < num_images)(lambda: compute_one(i))
            else:
                compute_one(i)
            return carry

        lax.fori_loop(0, imgs_per_step, body, 0, unroll=True)


def _vmem_capacity_bytes():
    try:
        return int(pltpu.get_tpu_info().vmem_capacity_bytes)
    except Exception:
        return 64 * 1024 * 1024        # conservative fallback (v7x per-TensorCore)


def fg_xcorr(template, search, template_area, norm=False, *,
             out_dtype=None, compute_dtype=None, vmem_budget_bytes=None):
    """JAX/Pallas equivalent of FGXCorr.forward.

    Args:
      template: [t_batch, C, Ht, Wt]  (NCHW, like PyTorch)
      search:   [s_batch, C, Hs, Ws]  (NCHW, like PyTorch)
      template_area: int, must equal Ht*Wt
      norm: True -> cosine similarity, False -> inner product
      out_dtype: output dtype; defaults to the promoted input dtype (so bf16
        inputs produce bf16 output).  Pass jnp.float32 for an f32 cost volume.
      compute_dtype: optionally cast MXU operands (e.g. jnp.bfloat16) before
        the kernel; None keeps the native input dtype / numerics.
    Returns:
      fg_xcorr: [s_batch, Ht*Wt, Hs, Ws], num_images, num_sequences
    """
    t_batch, t_channel, t_height, t_width = template.shape
    s_batch, s_channel, s_height, s_width = search.shape
    assert t_channel == s_channel, "channel mismatch"
    assert template_area == t_height * t_width, "template area mismatch"

    num_images = s_batch // t_batch
    assert num_images * t_batch == s_batch, "s_batch must be a multiple of t_batch"

    if compute_dtype is not None:
        template = template.astype(compute_dtype)
        search = search.astype(compute_dtype)
    if out_dtype is None:
        out_dtype = jnp.promote_types(template.dtype, search.dtype)

    hwt = t_height * t_width
    hws = s_height * s_width

    # Template as [t_batch, HWt, C] (tiny transpose).  The broadcast over
    # num_images is expressed by the grid/index_map, never materialized in HBM.
    tpl = jnp.transpose(template.reshape(t_batch, t_channel, hwt), (0, 2, 1))
    # Search viewed as [num_images, t_batch, C, HWs]: a free reshape (flat
    # batch b = i*t_batch + j matches torch's expand(...).view(-1, ...)).
    srch = search.reshape(num_images, t_batch, s_channel, hws)

    # ---- generation-aware sizing -------------------------------------------
    vmem_cap = _vmem_capacity_bytes()
    big_vmem = vmem_cap >= 96 * 1024 * 1024            # v5e/v6e: 128 MiB; v7x: 64 MiB
    if vmem_budget_bytes is None:
        vmem_budget_bytes = (40 << 20) if big_vmem else (18 << 20)

    in_bytes = jnp.dtype(search.dtype).itemsize
    t_bytes = jnp.dtype(template.dtype).itemsize
    out_bytes = jnp.dtype(out_dtype).itemsize
    # VMEM footprints use (8,128)-tile-rounded extents.
    hwt_r = _round_up(hwt, 8)
    hws_r = _round_up(hws, 128)
    c_r = _round_up(s_channel, 8)
    per_img_bytes = in_bytes * c_r * hws_r + out_bytes * hwt_r * hws_r
    tpl_tile_bytes = t_bytes * hwt_r * _round_up(t_channel, 128)

    # Images per grid step: as many as the budget allows, but keep at least
    # min(8, total work) grid steps so the DMA pipeline and both v7x
    # TensorCores stay busy; bi need NOT divide num_images (tail is guarded).
    bi_budget = max(1, vmem_budget_bytes // per_img_bytes)
    min_steps = min(8, t_batch * num_images)
    req_blocks = pl.cdiv(min_steps, t_batch)
    bi_steps = max(1, num_images // req_blocks)
    bi = int(max(1, min(num_images, bi_budget, bi_steps)))
    n_img_blocks = int(pl.cdiv(num_images, bi))
    guard_tail = (n_img_blocks * bi != num_images)

    # VMEM limit from the actual double-buffered requirement, clamped per chip
    # (~112 MiB headroom on 128 MiB parts, ~48 MiB on v7x) — never below need.
    requirement = 2 * (bi * per_img_bytes + tpl_tile_bytes) + (4 << 20)
    vmem_ceiling = max(32 << 20, vmem_cap - (16 << 20))
    vmem_limit = int(min(max(requirement, 32 << 20), vmem_ceiling))

    # Lane-dim chunking inside the kernel: keep the f32 accumulator <= ~32 vregs.
    max_acc_elems = 32 * 8 * 128
    if hwt_r * hws_r <= max_acc_elems:
        chunks = ((0, hws),)
    else:
        lanes = max(128, min(512, (max_acc_elems // hwt_r) // 128 * 128))
        chunks = tuple((c0, min(lanes, hws - c0)) for c0 in range(0, hws, lanes))

    kernel = functools.partial(
        _fgxcorr_kernel, norm=norm, imgs_per_step=bi, num_images=num_images,
        chunks=chunks, guard_tail=guard_tail)

    out = pl.pallas_call(
        kernel,
        out_shape=jax.ShapeDtypeStruct((num_images, t_batch, hwt, hws), out_dtype),
        grid_spec=pltpu.PrefetchScalarGridSpec(
            num_scalar_prefetch=0,
            grid=(t_batch, n_img_blocks),
            in_specs=[
                # Template tile is constant along the inner (image) grid axis,
                # so its HBM->VMEM DMA is elided across those steps.
                pl.BlockSpec((1, hwt, t_channel), lambda j, ib: (j, 0, 0)),
                pl.BlockSpec((bi, 1, s_channel, hws), lambda j, ib: (ib, j, 0, 0)),
            ],
            out_specs=pl.BlockSpec((bi, 1, hwt, hws), lambda j, ib: (ib, j, 0, 0)),
        ),
        compiler_params=pltpu.CompilerParams(
            dimension_semantics=("parallel", "parallel"),
            vmem_limit_bytes=vmem_limit),
    )(tpl, srch)

    # [num_images, t_batch, HWt, HWs] -> [s_batch, HWt, Hs, Ws]; free reshape,
    # no slicing (the kernel writes the unpadded extents directly).
    fg = out.reshape(s_batch, hwt, s_height, s_width)
    # TODO(synk): torch's runtime `assert torch.all(norm_item != 0)` has no jit
    # equivalent; norm_item >= 1e-8 > 0 always holds by construction.
    return fg, num_images, t_batch


def _reference(template, search, norm=False):
    """Pure-JAX reference mirroring the PyTorch forward (f32)."""
    t_batch, c, th, tw = template.shape
    s_batch, _, sh, sw = search.shape
    num_images = s_batch // t_batch
    template = jnp.tile(template, (num_images, 1, 1, 1))
    t = jnp.transpose(template.reshape(s_batch, c, th * tw), (0, 2, 1)).astype(jnp.float32)
    s = search.reshape(s_batch, c, sh * sw).astype(jnp.float32)
    x = jnp.einsum("bqc,bck->bqk", t, s)
    if norm:
        mt = jnp.sqrt(jnp.sum(t * t, axis=2, keepdims=True))
        ms = jnp.sqrt(jnp.sum(s * s, axis=1, keepdims=True))
        x = x / (jnp.einsum("bqc,bck->bqk", mt, ms) + 1e-8)
    return x.reshape(s_batch, th * tw, sh, sw)


if __name__ == "__main__":
    key = jax.random.PRNGKey(0)

    # (t_batch, C, t_hw, s_batch, s_hw, dtype, tol)
    configs = [
        (2, 8, 4, 4, 8, jnp.float32, 1e-4),     # original small shapes (num_images=2)
        (2, 8, 4, 16, 8, jnp.float32, 1e-4),    # num_images=8 -> 2 images per grid step
        (2, 8, 4, 4, 8, jnp.bfloat16, 2e-2),    # bf16 in -> bf16 out (default out_dtype)
    ]

    ok = True
    for idx, (t_batch, channels, t_hw, s_batch, s_hw, dtype, tol) in enumerate(configs):
        k1, k2 = jax.random.split(jax.random.fold_in(key, idx))
        template = jax.random.normal(
            k1, (t_batch, channels, t_hw, t_hw), dtype=jnp.float32).astype(dtype)
        search = jax.random.normal(
            k2, (s_batch, channels, s_hw, s_hw), dtype=jnp.float32).astype(dtype)
        template_area = t_hw * t_hw

        for norm in (False, True):
            out, num_images, num_sequences = fg_xcorr(
                template, search, template_area, norm=norm)
            out = jax.block_until_ready(out)
            ref = _reference(template, search, norm=norm)
            assert out.shape == (s_batch, template_area, s_hw, s_hw), out.shape
            assert num_images == s_batch // t_batch
            assert num_sequences == t_batch
            if not jnp.allclose(out.astype(jnp.float32), ref, atol=tol, rtol=tol):
                ok = False

    if ok:
        print("KERNEL_OK")
</pallas_src>

<mosaic_0001>
module attributes {stable_mosaic.version = 11 : i64} {
  func.func @_fgxcorr_kernel(%arg0: i32, %arg1: i32, %arg2: memref<1x16x8xf32, #tpu.memory_space<vmem>>, %arg3: memref<1x1x8x64xf32, #tpu.memory_space<vmem>>, %arg4: memref<1x1x16x64xf32, #tpu.memory_space<vmem>>) attributes {dimension_semantics = [#tpu.dimension_semantics<parallel>, #tpu.dimension_semantics<parallel>], iteration_bounds = array<i64: 2, 2>, scalar_prefetch = 0 : i64, scratch_operands = 0 : i64, tpu.core_type = #tpu.core_type<tc>, window_params = [{transform_indices = @transform_0, window_bounds = array<i64: 1, 16, 8>}, {transform_indices = @transform_1, window_bounds = array<i64: 1, 1, 8, 64>}, {transform_indices = @transform_2, window_bounds = array<i64: 1, 1, 16, 64>}]} {
    %c0 = arith.constant 0 : index
    %c0_0 = arith.constant 0 : index
    %c0_1 = arith.constant 0 : index
    %0 = vector.load %arg2[%c0, %c0_0, %c0_1] : memref<1x16x8xf32, #tpu.memory_space<vmem>>, vector<1x16x8xf32>
    %1 = vector.shape_cast %0 : vector<1x16x8xf32> to vector<16x8xf32>
    %c0_2 = arith.constant 0 : index
    %c0_3 = arith.constant 0 : index
    %c0_4 = arith.constant 0 : index
    %c0_5 = arith.constant 0 : index
    %2 = vector.load %arg3[%c0_2, %c0_3, %c0_4, %c0_5] : memref<1x1x8x64xf32, #tpu.memory_space<vmem>>, vector<1x1x8x64xf32>
    %3 = vector.shape_cast %2 : vector<1x1x8x64xf32> to vector<8x64xf32>
    %cst = arith.constant dense<0.000000e+00> : vector<16x64xf32>
    %4 = tpu.matmul %1, %3, %cst {dimension_numbers = #tpu.dot_dimension_numbers<[1], [0], [0], [1], [0, 0, 1, 1], [], []>} : vector<16x8xf32>, vector<8x64xf32>, vector<16x64xf32> -> vector<16x64xf32>
    %c0_6 = arith.constant 0 : index
    %c0_7 = arith.constant 0 : index
    %c0_8 = arith.constant 0 : index
    %c0_9 = arith.constant 0 : index
    %5 = vector.load %arg4[%c0_6, %c0_7, %c0_8, %c0_9] : memref<1x1x16x64xf32, #tpu.memory_space<vmem>>, vector<1x1x16x64xf32>
    %6 = vector.shape_cast %5 : vector<1x1x16x64xf32> to vector<16x64xf32>
    %7 = vector.shape_cast %4 : vector<16x64xf32> to vector<1x1x16x64xf32>
    tpu.vector_store %arg4[%c0_6, %c0_7, %c0_8, %c0_9], %7 {strides = array<i32>} : memref<1x1x16x64xf32, #tpu.memory_space<vmem>>, vector<1x1x16x64xf32>,
    return
  }
  func.func @transform_0(%arg0: i32, %arg1: i32) -> (i32, i32, i32) {
    %c0_i32 = arith.constant 0 : i32
    %c0_i32_0 = arith.constant 0 : i32
    %c0_i32_1 = arith.constant 0 : i32
    return %arg0, %c0_i32, %c0_i32_0 : i32, i32, i32
  }
  func.func @transform_1(%arg0: i32, %arg1: i32) -> (i32, i32, i32, i32) {
    %c0_i32 = arith.constant 0 : i32
    %c0_i32_0 = arith.constant 0 : i32
    %c0_i32_1 = arith.constant 0 : i32
    return %arg1, %arg0, %c0_i32, %c0_i32_0 : i32, i32, i32, i32
  }
  func.func @transform_2(%arg0: i32, %arg1: i32) -> (i32, i32, i32, i32) {
    %c0_i32 = arith.constant 0 : i32
    %c0_i32_0 = arith.constant 0 : i32
    %c0_i32_1 = arith.constant 0 : i32
    return %arg1, %arg0, %c0_i32, %c0_i32_0 : i32, i32, i32, i32
  }
}

</mosaic_0001>

<bundles_post_ra>
// kernel: tpu_custom_call.1
= control target key start
LH: loop header
LB: loop body
LE: loop exit
PB: predicated region body
PF: predicated region fallthrough
CT: control target
= control target key end

     0   :  { %7 = vsyncpa [#allocation3], 0  ;;  %s739_s0 = inlined_call_operand.vmem [shape: f32[2,16,8], index: 0, kind: input, shape index: {}]   ;;  %s740_s1 = inlined_call_operand.vmem [shape: f32[2,2,8,64], index: 1, kind: input, shape index: {}]   ;;  %s741_s2 = inlined_call_operand.hbm [shape: f32[2,2,16,64], index: 2, kind: output, shape index: {}]  }
   0x1   :  { %9 = vsyncpa [#allocation3 + $0x1], 0  ;;  %s597_s9 = smov 0   ;;  %s599_s10 = smov 0  }
   0x2   :  { %s601_s11 = smov 0   ;;  %s603_s12 = smov 0  }
   0x3   :  { %s605_s13 = smov 0   ;;  %s607_s14 = smov 0  }
   0x4   :  { %s609_s15 = smov 0   ;;  %s611_s16 = smov 0  }
   0x5 LB: > { %s385_s17 = sadd.s32 4294967295, %s577_s16   ;;  %s386_s18 = sadd.s32 4294967294, %s577_s16   ;;  %s577_s16 = sphi %s611_s16, %s15_s16   ;;  %s573_s15 = sphi %s609_s15, %s750_s15   ;;  %s569_s14 = sphi %s607_s14, %s749_s14   ;;  %s565_s13 = sphi %s605_s13, %s748_s13   ;;  %s561_s12 = sphi %s603_s12, %s747_s12   ;;  %s557_s11 = sphi %s601_s11, %s746_s11   ;;  %s553_s10 = sphi %s599_s10, %s745_s10   ;;  %s549_s9 = sphi %s597_s9, %s744_s9  }
   0x6   : > { %s24_s19 = sadd.s32 1, %s569_s14  ;;  %s27_s20 = sadd.s32 1, %s573_s15 }
   0x7   : > { %p25_p0 = scmp.ge.s32.totalorder %s24_s19, 2  ;;  %p100_p1 = scmp.ne.s32.totalorder %s557_s11, %s553_s10 }
   0x8   : > { %p101_p2 = scmp.eq.s32.totalorder %s385_s17, 3  ;;  %p106_p5 = scmp.ne.s32.totalorder %s553_s10, %s549_s9 }
   0x9   : > { %s752_s19 = smov (%p25_p0, %s24_s19), 0  ;;  %s754_s20 = smov (!%p25_p0, %s27_s20), %s573_s15 }
   0xa   : > { %s85_s21 = ssub.s32 %s569_s14, %s752_s19  ;;  %p648_p3 = por %p101_p2, %p100_p1 }
   0xb   : > { %p29_p4 = scmp.ge.s32.totalorder %s754_s20, 2  ;;  %p107_p6 = scmp.eq.s32.totalorder %s386_s18, 3 }
   0xc   : > { %p389_p7 = scmp.ge.s32.totalorder %s577_s16, 1  ;;  %p144_p9 = scmp.lt.s32.totalorder %s577_s16, 5 }
   0xd   : > { %s756_s20 = smov (%p29_p4, %s754_s20), 0  ;;  %p657_p8 = por %p107_p6, %p106_p5 }
   0xe   : > { %s86_s24 = ssub.s32 %s573_s15, %s756_s20  ;;  %s90_s25 = sadd.s32 1, %s557_s11 }
   0xf   : > { %s87_s26 = sor.u32 %s86_s24, %s85_s21  ;;  %p145_p10 = pnand %p389_p7, %p144_p9 }
  0x10   : > { %p88_p11 = scmp.eq.s32.totalorder %s87_s26, 0  ;;  %p174_p12 = scmp.lt.s32.totalorder (!%p145_p10), %s565_s13, 1 }
  0x11   : > { %148 = sbr.rel (%p145_p10) target bundleno = 241 (0xf1), region = 28  ;;  %p179_p13 = scmp.lt.s32.totalorder (!%p145_p10), %s561_s12, 1 }
  0x12   : > { %s666_s27 = scalar_select %p88_p11, %s557_s11, %s90_s25  }
  0x13   : > { %s171_s24 = sand.u32 (!%p145_p10), 1, %s553_s10   ;;  %s398_s26 = sshll.u32 (!%p145_p10), %s565_s13, 1 }
  0x14   : > { %s390_s25 = sshll.u32 (!%p145_p10), %s171_s24, 4 }
  0x16   : > { %s175_s28 = scalar_select %p174_p12, %s565_s13, 1  ;;  %vm190_vm0 = vcmask 64512   ;;  %vm272_vm1 = vcmask 523264  }
  0x17   : > { %s180_s29 = scalar_select %p179_p13, %s561_s12, 1 }
  0x18   : > { %s403_s30 = sshll.u32 %s175_s28, 4 }
  0x19   : > { %s393_s3 = sshll.u32 %s180_s29, 1  ;;  %s178_s6 = scalar_lea.vmem %s739_s0, %s403_s30 }
  0x1a   : > { %s184_s7 = sadd.s32 %s393_s3, %s175_s28  ;;  %v187_v0 = vld [vmem:[%s178_s6] sm:$0xff]  ;;  %v188_v2 = vld [vmem:[%s178_s6 + $0x8] sm:$0xff]  ;;  %s399_s29 = sshll.u32 %s561_s12, 2 }
  0x1b   : > { %s394_s8 = sshll.u32 %s184_s7, 3  ;;  %409 = vmatprep.mubr.msk.f32.mxu0 %vm190_vm0, %v187_v0  ;;  %s288_s4 = sadd.s32 %s399_s29, %s398_s26 }
  0x1c   : > { %s186_s21 = scalar_lea.vmem %s740_s1, %s394_s8  ;;  %s173_s30 = scalar_lea.vmem [#allocation2], %s390_s25 }
  0x1d   : > { %v189_v1 = vld [vmem:[%s186_s21] sm:$0xff]  ;;  %s291_s28 = sshll.u32 %s173_s30, 4  ;;  %s400_s3 = sshll.u32 %s288_s4, 7  ;;  %s681_s28 = int_to_ptr.vmem [resolvable:$true] %s291_s28 }
  0x1e   : > { %407 = vmatprep.subr.mxu0 %v189_v1  ;;  %s686_s7 = scalar_lea.hbm %s741_s2, %s400_s3  ;;  %s688_s12 = scalar_lea.sflag [#allocation3], %s171_s24 }
  0x1f   : > { %408 = vmatpush3.msra.mxu0 %v189_v1  ;;  %s485_s13 = scalar_lea.vmem %s681_s28, 256  ;;  %s579_s8 = smov [#allocation2]  }
  0x20   : > { %410 = vmatmul.mubr.msk.f32.vlgmr.msra.gmra.mxu0 %vm190_vm0, %v188_v2  ;;  %p486_p0 = scmp.ne.s32.totalorder %s681_s28, %s485_s13  ;;  %s489_s17 = sshll.u32 %s579_s8, 4  ;;  %s490_s17 = int_to_ptr.vmem [resolvable:$false] %s489_s17 }
  0x21   : > { %s491_s18 = scalar_lea.vmem %s490_s17, 512  ;;  %p492_p4 = scmp.lt.s32.totalorder %s681_s28, %s490_s17 }
  0x22   : > { %p487_p1 = pnand %p486_p0, %p648_p3  ;;  %p493_p5 = scmp.lt.s32.totalorder %s491_s18, %s485_s13 }
  0x24   : > { %p488_p2 = pneg %p487_p1  ;;  %p494_p6 = por %p493_p5, %p492_p4 }
  0x26   : > { %p495_p7 = pnand %p494_p6, %p488_p2 }
  0xe0   : > { %v411_v3 = vpop.f32.mrf.mxu0 }
  0xe1   : > { %274 = vst.msk [vmem:[%s173_s30 + $0x8] sm:$0xff] %vm272_vm1, %v411_v3 }
  0xe2   : > { %v263_v4 = vpop.f32.mrf.mxu0 }
  0xe3   : > { %273 = vst.msk [vmem:[%s173_s30] sm:$0xff] %vm272_vm1, %v263_v4 }
  0xe4   : > { %498 = shalt.err (!%p495_p7)
}
  0xe5   : > { %s499_s21 = scalar_lea.hbm %s686_s7, 256  ;;  %s503_s26 = scalar_lea.hbm %s741_s2, 1024 }
  0xe6   : > { %p500_p9 = scmp.ne.s32.totalorder %s686_s7, %s499_s21  ;;  %p504_p12 = scmp.lt.s32.totalorder %s686_s7, %s741_s2 }
  0xe7   : > { %p505_p13 = scmp.lt.s32.totalorder %s503_s26, %s499_s21 }
  0xe8   : > { %p501_p10 = pnand %p500_p9, %p648_p3 }
  0xe9   : > { %p506_p0 = por %p505_p13, %p504_p12 }
  0xea   : > { %p502_p11 = pneg %p501_p10 }
  0xec   : > { %p507_p1 = pnand %p506_p0, %p502_p11 }
  0xee   : > { %510 = shalt.err (!%p507_p1)
}
  0xef   : > { %s580_s30 = smov 128   ;;  %s581_s3 = smov 8  }
  0xf0   : > { %412 = dma.vmem_to_hbm [thread:$0]  (%p648_p3), %s681_s28, 256, %s686_s7, %s688_s12, %s580_s30, %s580_s30, %s581_s3  }
  0xf1 PF: > { %p418_p2 = scmp.ge.s32.totalorder %s577_s16, 2  ;;  %s306_s5 = sand.u32 1, %s549_s9  }
  0xf2   : > { %s307_s6 = scalar_lea.sflag [#allocation3], %s306_s5 }
  0xf3   : > { %p415_p4 = pnand %p418_p2, %p657_p8 }
  0xf5   : > { %p416_p5 = pneg %p415_p4 }
  0xf7   : > { %544 = dma.done.wait (%p416_p5), %s307_s6, 256  }
  0xf8   : > { %546 = vsyncadd (%p416_p5), %s307_s6, 4294967040  ;;  %s15_s16 = sadd.s32 1, %s577_s16   ;;  %s744_s9 = smov %s553_s10 }
  0xf9   : > { %p12_p6 = scmp.ge.s32.totalorder %s15_s16, 6   ;;  %s745_s10 = smov %s557_s11 }
  0xfa   : > { %s746_s11 = smov %s666_s27  ;;  %s747_s12 = smov %s569_s14 }
  0xfb   : > { %s748_s13 = smov %s573_s15  ;;  %s749_s14 = smov %s752_s19 }
  0xfc   : > { %s750_s15 = smov %s756_s20  ;;  %14 = sbr.rel (!%p12_p6) target bundleno = 5 (0x5), region = 66 }
 0x101   :  { %312 = vsyncpa [#allocation3], 1 }
 0x102   :  { %314 = vsyncpa [#allocation3 + $0x1], 1 }

</bundles_post_ra>
